<compile_context>
chip_gen: v7x
topology: tpu7x:2x2x1
jax: 0.10.0
libtpu: 0.0.40
codegen_flags: <defaults>
</compile_context>

<pallas_src>
import functools

import jax
import jax.numpy as jnp
from jax.experimental import pallas as pl
from jax.experimental.pallas import tpu as pltpu


def _round_up(v, m):
    return ((v + m - 1) // m) * m


# ---------------------------------------------------------------------------
# Kernels
# ---------------------------------------------------------------------------
def _catavgmax_single_kernel(x_ref, avg_ref, max_ref, *, inv_hw):
    """Fast path: one spatial chunk holds the whole H*W extent."""
    x = x_ref[...].astype(jnp.float32)                 # (row_tile, hw)
    row_tile = x_ref.shape[0]
    avg = jnp.sum(x, axis=-1, keepdims=True) * jnp.float32(inv_hw)
    mx = jnp.max(x, axis=-1, keepdims=True)
    # One sublane->lane relayout per row tile so the stores are lane-dense.
    avg_ref[...] = avg.reshape(1, row_tile).astype(avg_ref.dtype)
    max_ref[...] = mx.reshape(1, row_tile).astype(max_ref.dtype)


def _catavgmax_acc_kernel(x_ref, avg_ref, max_ref, sum_acc, max_acc,
                          *, hw, need_mask):
    """General path: H*W is split into chunks along grid axis 1."""
    j = pl.program_id(1)

    @pl.when(j == 0)
    def _init():
        sum_acc[...] = jnp.zeros_like(sum_acc)
        max_acc[...] = jnp.full_like(max_acc, -jnp.inf)

    x = x_ref[...].astype(jnp.float32)                 # (row_tile, hw_tile)

    if need_mask:
        # Mask out-of-range lanes of the last (partial) spatial chunk so the
        # unspecified padding never corrupts sum or max.
        hw_tile = x_ref.shape[-1]
        lane = jax.lax.broadcasted_iota(jnp.int32, x.shape, 1) + j * hw_tile
        valid = lane < hw
        x_sum = jnp.where(valid, x, 0.0)
        x_max = jnp.where(valid, x, -jnp.inf)
    else:
        x_sum = x
        x_max = x

    sum_acc[...] += jnp.sum(x_sum, axis=-1, keepdims=True)
    max_acc[...] = jnp.maximum(max_acc[...],
                               jnp.max(x_max, axis=-1, keepdims=True))

    @pl.when(j == pl.num_programs(1) - 1)
    def _finalize():
        row_tile = sum_acc.shape[0]
        avg = sum_acc[...] * jnp.float32(1.0 / hw)     # divide by true H*W
        mx = max_acc[...]
        avg_ref[...] = avg.reshape(1, row_tile).astype(avg_ref.dtype)
        max_ref[...] = mx.reshape(1, row_tile).astype(max_ref.dtype)


# ---------------------------------------------------------------------------
# Tiling heuristics
# ---------------------------------------------------------------------------
_HW_CAP = 8192            # max lanes per spatial chunk (multiple of 128)
_ROW_CAP = 16384          # bound the per-tile output relayout / block size
_BUDGET = 8 * 1024 * 1024  # ~8 MiB per input buffer (x2 double-buffered)


def _choose_tiles(nc, hw, itemsize):
    # Lane (spatial) tile: full H*W when modest, otherwise 128-aligned chunks.
    hw_tile = hw if hw <= _HW_CAP else _HW_CAP

    # Sublane (row) tile sized from the VMEM budget; aligned so packed dtypes
    # keep full sublane tiles (f32: 8, bf16: 16, int8/fp8: 32 rows).
    row_align = max(8, 32 // itemsize)
    rows_fit = (_BUDGET // (hw_tile * itemsize)) // row_align * row_align
    rows_fit = max(row_align, min(rows_fit, _ROW_CAP))

    if nc <= rows_fit:
        if nc >= 2 * row_align:
            # Split into (at least) two row tiles so both TensorCores of a
            # megacore part get work on the "parallel" axis.
            row_tile = _round_up((nc + 1) // 2, row_align)
        else:
            row_tile = nc                   # tiny case: one full-extent block
    else:
        row_tile = rows_fit

    return row_tile, hw_tile


# ---------------------------------------------------------------------------
# Public entry point
# ---------------------------------------------------------------------------
@jax.jit
def adaptive_catavgmax_pool2d(x):
    """Pallas equivalent of torch.cat((adaptive_avg_pool2d(x, 1),
    adaptive_max_pool2d(x, 1)), dim=1).

    x: (N, C, H, W) array.  Returns (N, 2*C, 1, 1) with x.dtype.
    """
    n, c, h, w = x.shape
    nc = n * c
    hw = h * w
    itemsize = jnp.dtype(x.dtype).itemsize

    x2d = x.reshape(nc, hw)                 # zero-copy view of NCHW

    row_tile, hw_tile = _choose_tiles(nc, hw, itemsize)
    num_row_tiles = pl.cdiv(nc, row_tile)
    num_hw_tiles = pl.cdiv(hw, hw_tile)

    out_struct = jax.ShapeDtypeStruct((num_row_tiles, row_tile), x.dtype)
    out_block = pl.BlockSpec((1, row_tile), lambda i, *_: (i, 0))

    cost = pl.CostEstimate(
        flops=2 * nc * hw,
        transcendentals=0,
        bytes_accessed=nc * hw * itemsize
        + 2 * num_row_tiles * row_tile * itemsize,
    )

    if num_hw_tiles == 1:
        # Fast path: single spatial chunk, no accumulation state needed.
        kernel = functools.partial(_catavgmax_single_kernel, inv_hw=1.0 / hw)
        grid_spec = pltpu.PrefetchScalarGridSpec(
            num_scalar_prefetch=0,
            grid=(num_row_tiles,),
            in_specs=[pl.BlockSpec((row_tile, hw_tile), lambda i: (i, 0))],
            out_specs=[out_block, out_block],
        )
        dim_sem = ("parallel",)
    else:
        need_mask = (hw % hw_tile) != 0
        kernel = functools.partial(_catavgmax_acc_kernel, hw=hw,
                                   need_mask=need_mask)
        grid_spec = pltpu.PrefetchScalarGridSpec(
            num_scalar_prefetch=0,
            grid=(num_row_tiles, num_hw_tiles),
            in_specs=[pl.BlockSpec((row_tile, hw_tile), lambda i, j: (i, j))],
            out_specs=[out_block, out_block],
            scratch_shapes=[pltpu.VMEM((row_tile, 1), jnp.float32),
                            pltpu.VMEM((row_tile, 1), jnp.float32)],
        )
        dim_sem = ("parallel", "arbitrary")

    avg2d, max2d = pl.pallas_call(
        kernel,
        out_shape=(out_struct, out_struct),
        grid_spec=grid_spec,
        compiler_params=pltpu.CompilerParams(
            dimension_semantics=dim_sem,
            vmem_limit_bytes=32 * 1024 * 1024,
        ),
        cost_estimate=cost,
    )(x2d)

    x_avg = avg2d.reshape(-1)[:nc].reshape(n, c, 1, 1)
    x_max = max2d.reshape(-1)[:nc].reshape(n, c, 1, 1)
    return jnp.concatenate([x_avg, x_max], axis=1)


def _reference(x):
    x_avg = jnp.mean(x, axis=(2, 3), keepdims=True)
    x_max = jnp.max(x, axis=(2, 3), keepdims=True)
    return jnp.concatenate([x_avg, x_max], axis=1)


if __name__ == "__main__":
    key = jax.random.PRNGKey(0)
    x = jax.random.normal(key, (2, 4, 16, 16), dtype=jnp.float32)

    out = adaptive_catavgmax_pool2d(x)
    out = jax.block_until_ready(out)

    ref = _reference(x)
    assert out.shape == (2, 8, 1, 1), out.shape
    assert out.dtype == x.dtype, out.dtype
    assert jnp.allclose(out, ref, atol=1e-5, rtol=1e-5), (
        jnp.max(jnp.abs(out - ref))
    )
    print("KERNEL_OK")
</pallas_src>

<mosaic_0001>
module attributes {stable_mosaic.version = 11 : i64} {
  func.func @_catavgmax_single_kernel(%arg0: i32, %arg1: memref<8x256xf32, #tpu.memory_space<vmem>>, %arg2: memref<1x8xf32, #tpu.memory_space<vmem>>, %arg3: memref<1x8xf32, #tpu.memory_space<vmem>>) attributes {dimension_semantics = [#tpu.dimension_semantics<parallel>], iteration_bounds = array<i64: 1>, scalar_prefetch = 0 : i64, scratch_operands = 0 : i64, tpu.core_type = #tpu.core_type<tc>, window_params = [{transform_indices = @transform_0, window_bounds = array<i64: 8, 256>}, {transform_indices = @transform_1, window_bounds = array<i64: 1, 8>}, {transform_indices = @transform_2, window_bounds = array<i64: 1, 8>}]} {
    %c0 = arith.constant 0 : index
    %c0_0 = arith.constant 0 : index
    %0 = vector.load %arg1[%c0, %c0_0] : memref<8x256xf32, #tpu.memory_space<vmem>>, vector<8x256xf32>
    %cst = arith.constant dense<0.000000e+00> : vector<8xf32>
    %1 = vector.multi_reduction <add>, %0, %cst [1] : vector<8x256xf32> to vector<8xf32>
    %2 = vector.shape_cast %1 : vector<8xf32> to vector<8x1xf32>
    %cst_1 = arith.constant 3.906250e-03 : f32
    %3 = vector.broadcast %cst_1 : f32 to vector<8x1xf32>
    %4 = arith.mulf %2, %3 : vector<8x1xf32>
    %cst_2 = arith.constant dense<0xFF800000> : vector<8xf32>
    %5 = vector.multi_reduction <maximumf>, %0, %cst_2 [1] : vector<8x256xf32> to vector<8xf32>
    %6 = vector.shape_cast %5 : vector<8xf32> to vector<8x1xf32>
    %7 = vector.shape_cast %4 : vector<8x1xf32> to vector<1x8xf32>
    %c0_3 = arith.constant 0 : index
    %c0_4 = arith.constant 0 : index
    %8 = vector.load %arg2[%c0_3, %c0_4] : memref<1x8xf32, #tpu.memory_space<vmem>>, vector<1x8xf32>
    tpu.vector_store %arg2[%c0_3, %c0_4], %7 {strides = array<i32>} : memref<1x8xf32, #tpu.memory_space<vmem>>, vector<1x8xf32>,
    %9 = vector.shape_cast %6 : vector<8x1xf32> to vector<1x8xf32>
    %c0_5 = arith.constant 0 : index
    %c0_6 = arith.constant 0 : index
    %10 = vector.load %arg3[%c0_5, %c0_6] : memref<1x8xf32, #tpu.memory_space<vmem>>, vector<1x8xf32>
    tpu.vector_store %arg3[%c0_5, %c0_6], %9 {strides = array<i32>} : memref<1x8xf32, #tpu.memory_space<vmem>>, vector<1x8xf32>,
    return
  }
  func.func @transform_0(%arg0: i32) -> (i32, i32) {
    %c0_i32 = arith.constant 0 : i32
    %c0_i32_0 = arith.constant 0 : i32
    return %arg0, %c0_i32 : i32, i32
  }
  func.func @transform_1(%arg0: i32) -> (i32, i32) {
    %c0_i32 = arith.constant 0 : i32
    %c0_i32_0 = arith.constant 0 : i32
    return %arg0, %c0_i32 : i32, i32
  }
  func.func @transform_2(%arg0: i32) -> (i32, i32) {
    %c0_i32 = arith.constant 0 : i32
    %c0_i32_0 = arith.constant 0 : i32
    return %arg0, %c0_i32 : i32, i32
  }
}

</mosaic_0001>

<bundles_post_ra>
// kernel: adaptive_catavgmax_pool2d.1
= control target key start
LH: loop header
LB: loop body
LE: loop exit
PB: predicated region body
PF: predicated region fallthrough
CT: control target
= control target key end

     0   :  { %v20_v4 = vlaneseq  ;;  %vm27_vm0 = vcmask 57344   ;;  %s71_s0 = inlined_call_operand.vmem [shape: f32[8,256], index: 0, kind: input, shape index: {}]   ;;  %s72_s1 = inlined_call_operand.vmem [shape: f32[1,8], index: 1, kind: output, shape index: {0}]   ;;  %s73_s2 = inlined_call_operand.vmem [shape: f32[1,8], index: 2, kind: output, shape index: {1}]  }
   0x1   :  { %v10_v0 = vld [vmem:[%s71_s0] sm:$0xff]  ;;  %v11_v1 = vld [vmem:[%s71_s0 + $0x8] sm:$0xff] }
   0x2   :  { %v12_v2 = vadd.f32 %v11_v1, %v10_v0  ;;  %v16_v3 = vmax.f32 %v10_v0, %v11_v1  ;;  %v21_v5 = vand.u32 127, %v20_v4  ;;  %v23_v6 = vshrl.u32 %v20_v4, 7 }
   0x4   :  { %13 = vadd.xlane.f32.xlu0 %v12_v2  ;;  %v24_v7 = vsub.s32 %v21_v5, %v23_v6 }
   0x8   :  { %17 = vmax.xlane.f32.xlu0 %v16_v3 }
  0x91   :  { %v14_v8 = vpop.xlane.xlu0 %13 }
  0x92   :  { %v15_v9 = vmul.f32 0.00390625, %v14_v8 }
  0x94   :  { %v25_v10 = vrot.slane %v15_v9, %v24_v7 }
  0x95   :  { %v18_v11 = vpop.xlane.xlu0 %17 }
  0x96   :  { %28 = vst.msk [vmem:[%s72_s1] sm:$0x1] %vm27_vm0, %v25_v10  ;;  %v33_v12 = vrot.slane %v18_v11, %v24_v7 }
  0x98   :  { %35 = vst.msk [vmem:[%s73_s2] sm:$0x1] %vm27_vm0, %v33_v12 }

</bundles_post_ra>
